<compile_context>
chip_gen: v7x
topology: tpu7x:2x2x1
jax: 0.10.0
libtpu: 0.0.40
codegen_flags: <defaults>
</compile_context>

<pallas_src>
import functools

import numpy as np
import jax
import jax.numpy as jnp
from jax import lax
from jax.experimental import pallas as pl
from jax.experimental.pallas import tpu as pltpu

_LANE = 128
_SUBLANE = 8


def _disp_reg_kernel(x_ref, o_ref, *, disp_vals, base, step, unrolled):
    # x_ref: (1, D, tR, 128) tile of the cost volume; o_ref: (1, 1, tR, 128)
    D = x_ref.shape[1]
    tR, L = x_ref.shape[2], x_ref.shape[3]

    if unrolled:
        # Small D: fully unrolled weighted sum with compile-time scalar weights.
        # Each step is a full-vreg VPU multiply-add (scalar splat); the reduction
        # over D is cross-vreg adds -- no XLU, no MXU, no disp tensor DMA.
        acc = x_ref[0, 0].astype(jnp.float32) * disp_vals[0]
        for k in range(1, D):
            acc = acc + x_ref[0, k].astype(jnp.float32) * disp_vals[k]
    else:
        # Large D: rolled loop (keeps code size / compile time bounded) with two
        # independent f32 accumulator chains for ILP.  disp[k] = base + k*step
        # is computed from the loop index -- no SMEM table needed.
        half = D // 2

        def body(i, carry):
            a0, a1 = carry
            k0 = 2 * i
            k1 = k0 + 1
            d0 = base + k0.astype(jnp.float32) * step
            d1 = base + k1.astype(jnp.float32) * step
            a0 = a0 + x_ref[0, k0].astype(jnp.float32) * d0
            a1 = a1 + x_ref[0, k1].astype(jnp.float32) * d1
            return a0, a1

        zeros = jnp.zeros((tR, L), jnp.float32)
        a0, a1 = lax.fori_loop(0, half, body, (zeros, zeros), unroll=4)
        acc = a0 + a1
        if D % 2:  # odd tail handled with a compile-time constant weight
            acc = acc + x_ref[0, D - 1].astype(jnp.float32) * disp_vals[D - 1]

    o_ref[0, 0] = acc.astype(o_ref.dtype)


def disparity_regression2(x, start, end, stride=1, *,
                          max_tile_bytes=8 * 1024 * 1024,
                          unroll_threshold=64):
    """x: (B, D, H, W); returns (B, 1, H, W) = sum_d x[:, d] * disp[d]."""
    B, D, H, W = x.shape

    # Deterministic "parameter" construction, mirroring the PyTorch __init__.
    disp_np = np.arange(start * stride, end * stride, stride, dtype=np.float32)
    assert disp_np.shape[0] == D, (
        f"channel dim {D} must equal len(disp) {disp_np.shape[0]} "
        f"(start={start}, end={end}, stride={stride})"
    )
    disp_vals = tuple(float(v) for v in disp_np)

    S = H * W
    itemsize = jnp.dtype(x.dtype).itemsize

    # ---- lane-dense spatial view (no full-volume pad in the common case) ----
    if S % _LANE == 0:
        rows = S // _LANE
        x_tiled = x.reshape(B, D, rows, _LANE)          # contiguous -> free reshape
        padded = False
    else:
        # TODO(synk): ragged H*W (not a multiple of 128) falls back to a minimal
        # pad-to-next-lane-multiple; this costs one extra HBM round trip of x.
        S_pad = -(-S // _LANE) * _LANE
        rows = S_pad // _LANE
        x_tiled = jnp.pad(
            x.reshape(B, D, S), ((0, 0), (0, 0), (0, S_pad - S))
        ).reshape(B, D, rows, _LANE)
        padded = True

    # ---- spatial tile height (sublane rows) ----
    row_bytes = D * _LANE * itemsize                    # one sublane-row of an x tile
    budget_rows = max(_SUBLANE,
                      (max_tile_bytes // row_bytes) // _SUBLANE * _SUBLANE)
    if rows <= budget_rows:
        tR, n_s = rows, 1          # single spatial tile (full extent, no 8-multiple needed)
    else:
        tR = budget_rows           # multiple of 8; last tile may be partial (pipeline clips)
        n_s = -(-rows // tR)

    # ---- explicit VMEM budget: 2x double-buffered (input + output) tiles ----
    in_tile_bytes = D * tR * _LANE * itemsize
    out_tile_bytes = tR * _LANE * itemsize
    vmem_need = 2 * (in_tile_bytes + out_tile_bytes) + (2 << 20)
    vmem_limit = int(min(max(vmem_need, 32 << 20), 48 << 20))
    # TODO(synk): for extreme D (tR floored at 8 still overshooting the budget),
    # split D across a reduction grid axis with an f32 accumulator instead.

    kernel = functools.partial(
        _disp_reg_kernel,
        disp_vals=disp_vals,
        base=float(start * stride),
        step=float(stride),
        unrolled=(D <= unroll_threshold),
    )

    # Put the larger-extent parallel axis outermost so megacore / v7x dual-TC
    # sharding has work even when B (or n_s) is tiny.
    if n_s >= B:
        grid = (n_s, B)
        idx_map = lambda s, b: (b, 0, s, 0)
    else:
        grid = (B, n_s)
        idx_map = lambda b, s: (b, 0, s, 0)

    cost = pl.CostEstimate(
        flops=2 * B * D * rows * _LANE,
        transcendentals=0,
        bytes_accessed=(B * D * rows * _LANE + B * rows * _LANE) * itemsize,
    )

    out_tiled = pl.pallas_call(
        kernel,
        out_shape=jax.ShapeDtypeStruct((B, 1, rows, _LANE), x.dtype),
        grid_spec=pltpu.PrefetchScalarGridSpec(
            num_scalar_prefetch=0,
            grid=grid,
            in_specs=[pl.BlockSpec((1, D, tR, _LANE), idx_map)],
            out_specs=pl.BlockSpec((1, 1, tR, _LANE), idx_map),
        ),
        compiler_params=pltpu.CompilerParams(
            dimension_semantics=("parallel", "parallel"),
            vmem_limit_bytes=vmem_limit,
        ),
        cost_estimate=cost,
    )(x_tiled)

    out = out_tiled.reshape(B, 1, rows * _LANE)
    if padded:
        out = out[:, :, :S]
    return out.reshape(B, 1, H, W)


def disparity_regression2_ref(x, start, end, stride=1):
    disp = jnp.arange(start * stride, end * stride, stride, dtype=jnp.float32)
    disp = disp.reshape(1, -1, 1, 1)
    return jnp.sum(x * disp, axis=1, keepdims=True).astype(x.dtype)


if __name__ == "__main__":
    key = jax.random.PRNGKey(0)

    # (shape, dtype, start, end, stride, rtol, atol)
    cases = [
        ((2, 4, 16, 16), jnp.float32, 0, 4, 1, 1e-5, 1e-4),   # small D: unrolled path
        ((1, 96, 16, 24), jnp.float32, 0, 96, 1, 1e-5, 1e-3),  # large D: fori-loop path
        ((2, 8, 8, 16), jnp.bfloat16, 1, 9, 2, 2e-2, 1e-1),    # bf16 input, f32 accumulation
        ((1, 4, 6, 10), jnp.float32, 0, 4, 1, 1e-5, 1e-4),     # ragged H*W fallback
    ]

    for shape, dtype, start, end, stride, rtol, atol in cases:
        key, sub = jax.random.split(key)
        B, D, H, W = shape
        x = jax.random.normal(sub, shape, dtype=jnp.float32).astype(dtype)

        out = jax.block_until_ready(disparity_regression2(x, start, end, stride))
        ref = disparity_regression2_ref(x, start, end, stride)

        assert out.shape == (B, 1, H, W), (shape, out.shape)
        ok = jnp.allclose(out.astype(jnp.float32), ref.astype(jnp.float32),
                          rtol=rtol, atol=atol)
        assert ok, f"mismatch vs reference for case {shape} {dtype}"

    print("KERNEL_OK")
</pallas_src>

<mosaic_0001>
module attributes {stable_mosaic.version = 11 : i64} {
  func.func @_disp_reg_kernel(%arg0: i32, %arg1: i32, %arg2: memref<1x4x2x128xf32, #tpu.memory_space<vmem>>, %arg3: memref<1x1x2x128xf32, #tpu.memory_space<vmem>>) attributes {dimension_semantics = [#tpu.dimension_semantics<parallel>, #tpu.dimension_semantics<parallel>], iteration_bounds = array<i64: 2, 1>, scalar_prefetch = 0 : i64, scratch_operands = 0 : i64, tpu.core_type = #tpu.core_type<tc>, window_params = [{transform_indices = @transform_0, window_bounds = array<i64: 1, 4, 2, 128>}, {transform_indices = @transform_1, window_bounds = array<i64: 1, 1, 2, 128>}]} {
    %c0 = arith.constant 0 : index
    %c0_0 = arith.constant 0 : index
    %c0_1 = arith.constant 0 : index
    %c0_2 = arith.constant 0 : index
    %0 = vector.load %arg2[%c0, %c0_0, %c0_1, %c0_2] : memref<1x4x2x128xf32, #tpu.memory_space<vmem>>, vector<1x1x2x128xf32>
    %1 = vector.shape_cast %0 : vector<1x1x2x128xf32> to vector<2x128xf32>
    %cst = arith.constant 0.000000e+00 : f32
    %2 = vector.broadcast %cst : f32 to vector<2x128xf32>
    %3 = arith.mulf %1, %2 : vector<2x128xf32>
    %c0_3 = arith.constant 0 : index
    %c1 = arith.constant 1 : index
    %c0_4 = arith.constant 0 : index
    %c0_5 = arith.constant 0 : index
    %4 = vector.load %arg2[%c0_3, %c1, %c0_4, %c0_5] : memref<1x4x2x128xf32, #tpu.memory_space<vmem>>, vector<1x1x2x128xf32>
    %5 = vector.shape_cast %4 : vector<1x1x2x128xf32> to vector<2x128xf32>
    %cst_6 = arith.constant 1.000000e+00 : f32
    %6 = vector.broadcast %cst_6 : f32 to vector<2x128xf32>
    %7 = arith.mulf %5, %6 : vector<2x128xf32>
    %8 = arith.addf %3, %7 : vector<2x128xf32>
    %c0_7 = arith.constant 0 : index
    %c2 = arith.constant 2 : index
    %c0_8 = arith.constant 0 : index
    %c0_9 = arith.constant 0 : index
    %9 = vector.load %arg2[%c0_7, %c2, %c0_8, %c0_9] : memref<1x4x2x128xf32, #tpu.memory_space<vmem>>, vector<1x1x2x128xf32>
    %10 = vector.shape_cast %9 : vector<1x1x2x128xf32> to vector<2x128xf32>
    %cst_10 = arith.constant 2.000000e+00 : f32
    %11 = vector.broadcast %cst_10 : f32 to vector<2x128xf32>
    %12 = arith.mulf %10, %11 : vector<2x128xf32>
    %13 = arith.addf %8, %12 : vector<2x128xf32>
    %c0_11 = arith.constant 0 : index
    %c3 = arith.constant 3 : index
    %c0_12 = arith.constant 0 : index
    %c0_13 = arith.constant 0 : index
    %14 = vector.load %arg2[%c0_11, %c3, %c0_12, %c0_13] : memref<1x4x2x128xf32, #tpu.memory_space<vmem>>, vector<1x1x2x128xf32>
    %15 = vector.shape_cast %14 : vector<1x1x2x128xf32> to vector<2x128xf32>
    %cst_14 = arith.constant 3.000000e+00 : f32
    %16 = vector.broadcast %cst_14 : f32 to vector<2x128xf32>
    %17 = arith.mulf %15, %16 : vector<2x128xf32>
    %18 = arith.addf %13, %17 : vector<2x128xf32>
    %c0_15 = arith.constant 0 : index
    %c0_16 = arith.constant 0 : index
    %c0_17 = arith.constant 0 : index
    %c0_18 = arith.constant 0 : index
    %19 = vector.load %arg3[%c0_15, %c0_16, %c0_17, %c0_18] : memref<1x1x2x128xf32, #tpu.memory_space<vmem>>, vector<1x1x2x128xf32>
    %20 = vector.shape_cast %19 : vector<1x1x2x128xf32> to vector<2x128xf32>
    %21 = vector.shape_cast %18 : vector<2x128xf32> to vector<1x1x2x128xf32>
    tpu.vector_store %arg3[%c0_15, %c0_16, %c0_17, %c0_18], %21 {strides = array<i32>} : memref<1x1x2x128xf32, #tpu.memory_space<vmem>>, vector<1x1x2x128xf32>,
    return
  }
  func.func @transform_0(%arg0: i32, %arg1: i32) -> (i32, i32, i32, i32) {
    %c0_i32 = arith.constant 0 : i32
    %c0_i32_0 = arith.constant 0 : i32
    %c0_i32_1 = arith.constant 0 : i32
    return %arg0, %c0_i32, %arg1, %c0_i32_0 : i32, i32, i32, i32
  }
  func.func @transform_1(%arg0: i32, %arg1: i32) -> (i32, i32, i32, i32) {
    %c0_i32 = arith.constant 0 : i32
    %c0_i32_0 = arith.constant 0 : i32
    %c0_i32_1 = arith.constant 0 : i32
    return %arg0, %c0_i32, %arg1, %c0_i32_0 : i32, i32, i32, i32
  }
}

</mosaic_0001>

<bundles_post_ra>
// kernel: tpu_custom_call.1
= control target key start
LH: loop header
LB: loop body
LE: loop exit
PB: predicated region body
PF: predicated region fallthrough
CT: control target
= control target key end

     0   :  { %6 = vsyncpa [#allocation3], 0  ;;  %s646_s0 = inlined_call_operand.hbm [shape: f32[2,4,2,128], index: 0, kind: input, shape index: {}]   ;;  %s647_s1 = inlined_call_operand.hbm [shape: f32[2,1,2,128], index: 1, kind: output, shape index: {}]  }
   0x1   :  { %8 = vsyncpa [#allocation3 + $0x1], 0 }
   0x2   :  { %9 = vsyncpa [#allocation4], 0 }
   0x3   :  { %11 = vsyncpa [#allocation4 + $0x1], 0  ;;  %s472_s6 = smov 0   ;;  %s474_s7 = smov 0  }
   0x4   :  { %s476_s8 = smov 0   ;;  %s478_s9 = smov 0  }
   0x5   :  { %s480_s10 = smov 0   ;;  %s482_s11 = smov 0  }
   0x6 LB: > { %s262_s12 = sadd.s32 4294967295, %s456_s11   ;;  %s263_s13 = sadd.s32 4294967294, %s456_s11   ;;  %s456_s11 = sphi %s482_s11, %s17_s11   ;;  %s452_s10 = sphi %s480_s10, %s662_s10   ;;  %s448_s9 = sphi %s478_s9, %s661_s9   ;;  %s444_s8 = sphi %s476_s8, %s660_s8   ;;  %s440_s7 = sphi %s474_s7, %s659_s7   ;;  %s436_s6 = sphi %s472_s6, %s658_s6  }
   0x7   : > { %s29_s14 = sadd.s32 1, %s452_s10  ;;  %s38_s15 = sadd.s32 1, %s444_s8 }
   0x8   : > { %p31_p0 = scmp.ge.s32.totalorder %s29_s14, 2  ;;  %p45_p1 = scmp.ne.s32.totalorder %s444_s8, %s440_s7 }
   0x9   : > { %p46_p2 = scmp.eq.s32.totalorder %s456_s11, 0  ;;  %p51_p3 = scmp.ne.s32.totalorder %s440_s7, %s436_s6 }
   0xa   : > { %s664_s14 = smov (%p31_p0, %s29_s14), 0  ;;  %p52_p5 = scmp.eq.s32.totalorder %s262_s12, 0 }
   0xb   : > { %p513_p4 = por %p46_p2, %p45_p1  ;;  %s33_s17 = ssub.s32 %s452_s10, %s664_s14 }
   0xc   : > { %p77_p6 = scmp.eq.s32.totalorder %s262_s12, 1  ;;  %p36_p7 = scmp.eq.s32.totalorder %s33_s17, 0 }
   0xd   : > { %p519_p8 = por %p52_p5, %p51_p3  ;;  %p83_p10 = scmp.eq.s32.totalorder %s263_s13, 1 }
   0xe   : > { %p523_p9 = por %p77_p6, %p45_p1  ;;  %p292_p13 = scmp.lt.s32.totalorder %s456_s11, 2 }
   0xf   : > { %s528_s20 = scalar_select %p36_p7, %s444_s8, %s38_s15  }
  0x10   : > { %s651_s19 = scalar_select %p523_p9, 1, 0 }
  0x11   : > { %p530_p11 = por %p83_p10, %p51_p3  ;;  %s103_s22 = sand.u32 1, %s444_s8  }
  0x12   : > { %s266_s23 = sshll.u32 %s103_s22, 3  ;;  %s279_s24 = sshll.u32 %s452_s10, 7 }
  0x13   : > { %s652_s21 = scalar_select %p530_p11, 1, 0 }
  0x14   : > { %s541_s27 = scalar_lea.hbm %s646_s0, %s279_s24  ;;  %s107_s28 = scalar_lea.vmem [#allocation2], %s266_s23 }
  0x15   : > { %s115_s29 = sshll.u32 %s107_s28, 4  ;;  %p547_p0 = pnand %p292_p13, %p513_p4  ;;  %s543_s29 = int_to_ptr.vmem [resolvable:$true] %s115_s29 }
  0x16   : > { %s552_s2 = scalar_lea.sflag [#allocation3], %s103_s22  ;;  %s344_s3 = scalar_lea.hbm %s541_s27, 128 }
  0x17   : > { %p345_p2 = scmp.ne.s32.totalorder %s541_s27, %s344_s3  ;;  %p346_p3 = pneg %p547_p0 }
  0x18   : > { %s349_s12 = scalar_lea.hbm %s646_s0, 256  ;;  %p350_p4 = scmp.lt.u32.totalorder %s541_s27, %s646_s0 }
  0x19   : > { %p347_p5 = pnand %p346_p3, %p345_p2  ;;  %p351_p7 = scmp.lt.u32.totalorder %s349_s12, %s344_s3 }
  0x1a   : > { %p353_p13 = scmp.lt.u32.totalorder %s344_s3, %s541_s27 }
  0x1b   : > { %p348_p6 = pneg %p347_p5  ;;  %p352_p10 = por %p351_p7, %p350_p4 }
  0x1d   : > { %p354_p12 = por %p353_p13, %p352_p10 }
  0x1f   : > { %p355_p1 = pnand %p354_p12, %p348_p6 }
  0x21   : > { %358 = shalt.err (!%p355_p1)
}
  0x22   : > { %s359_s16 = scalar_lea.vmem %s543_s29, 128  ;;  %s458_s17 = smov [#allocation2]  }
  0x23   : > { %p360_p2 = scmp.ne.s32.totalorder %s543_s29, %s359_s16  ;;  %s364_s22 = sshll.u32 %s458_s17, 4  ;;  %s365_s22 = int_to_ptr.vmem [resolvable:$false] %s364_s22 }
  0x24   : > { %s366_s23 = scalar_lea.vmem %s365_s22, 256  ;;  %p367_p9 = scmp.lt.s32.totalorder %s543_s29, %s365_s22 }
  0x25   : > { %p362_p5 = pnand %p360_p2, %p346_p3  ;;  %p368_p4 = scmp.lt.s32.totalorder %s366_s23, %s359_s16 }
  0x27   : > { %p363_p11 = pneg %p362_p5  ;;  %p369_p7 = por %p368_p4, %p367_p9 }
  0x29   : > { %p370_p10 = pnand %p369_p7, %p363_p11 }
  0x2b   : > { %373 = shalt.err (!%p370_p10)
}
  0x2c   : > { %s459_s24 = smov 32   ;;  %s460_s25 = smov 2  }
  0x2d   : > { %287 = dma.hbm_to_vmem [thread:$0]  (!%p547_p0), %s541_s27, 128, %s543_s29, %s552_s2, %s459_s24, %s459_s24, %s460_s25  }
  0x2e   : > { %p123_p12 = scmp.lt.s32.totalorder %s456_s11, 3  ;;  %p654_p1 = scmp.ge.s32.totalorder %s456_s11, 1 }
  0x30   : > { %p124_p3 = pnand %p654_p1, %p123_p12 }
  0x31   : > { %s584_s26 = sand.u32 (!%p124_p3), 1, %s440_s7  }
  0x32   : > { %127 = sbr.rel (%p124_p3) target bundleno = 85 (0x55), region = 24  ;;  %s270_s28 = sshll.u32 (!%p124_p3), %s584_s26, 3 }
  0x33   : > { %s130_s3 = scalar_lea.sflag (!%p124_p3), [#allocation3], %s584_s26  ;;  %s133_s4 = scalar_lea.vmem (!%p124_p3), [#allocation2], %s270_s28 }
  0x39   : > { %427 = dma.done.wait (%p519_p8), %s130_s3, 128  }
  0x3a   : > { %429 = vsyncadd (%p519_p8), %s130_s3, 4294967168  ;;  %s271_s27 = sshll.u32 %s584_s26, 1  ;;  %v152_v0 = vld [vmem:[%s133_s4] sm:$0x3]  ;;  %v272_v1 = vld [vmem:[%s133_s4 + $0x2] sm:$0x3] }
  0x3b   : > { %v273_v2 = vld [vmem:[%s133_s4 + $0x4] sm:$0x3]  ;;  %v153_v3 = vmul.f32 0.0, %v152_v0  ;;  %v274_v5 = vld [vmem:[%s133_s4 + $0x6] sm:$0x3]  ;;  %s151_s29 = scalar_lea.vmem [#allocation5], %s271_s27 }
  0x3c   : > { %v159_v4 = vmul.f32 2.0, %v273_v2  ;;  %v163_v7 = vmul.f32 3.0, %v274_v5  ;;  %s181_s30 = sshll.u32 %s151_s29, 4  ;;  %s276_s2 = sshll.u32 %s448_s9, 5  ;;  %s594_s30 = int_to_ptr.vmem [resolvable:$true] %s181_s30 }
  0x3d   : > { %v156_v6 = vadd.f32 %v272_v1, %v153_v3  ;;  %s599_s12 = scalar_lea.hbm %s647_s1, %s276_s2  ;;  %s167_s13 = scalar_lea.sflag [#allocation4], %s584_s26 }
  0x3e   : > { %s374_s15 = scalar_lea.vmem %s594_s30, 32  ;;  %p655_p9 = scmp.ne.s32.totalorder %s651_s19, 0 }
  0x3f   : > { %v160_v8 = vadd.f32 %v159_v4, %v156_v6  ;;  %p375_p8 = scmp.ne.s32.totalorder %s594_s30, %s374_s15  ;;  %s461_s9 = smov [#allocation5]  }
  0x40   : > { %s378_s16 = sshll.u32 %s461_s9, 4  ;;  %s379_s16 = int_to_ptr.vmem [resolvable:$false] %s378_s16 }
  0x41   : > { %v164_v9 = vadd.f32 %v163_v7, %v160_v8  ;;  %p376_p11 = pnand %p375_p8, %p655_p9  ;;  %s380_s17 = scalar_lea.vmem %s379_s16, 64 }
  0x42   : > { %p381_p6 = scmp.lt.s32.totalorder %s594_s30, %s379_s16  ;;  %p382_p13 = scmp.lt.s32.totalorder %s380_s17, %s374_s15 }
  0x43   : > { %165 = vst [vmem:[%s151_s29] sm:$0x3] %v164_v9  ;;  %p377_p0 = pneg %p376_p11 }
  0x44   : > { %p383_p2 = por %p382_p13, %p381_p6 }
  0x46   : > { %p384_p5 = pnand %p383_p2, %p377_p0 }
  0x48   : > { %387 = shalt.err (!%p384_p5)
}
  0x49   : > { %s388_s22 = scalar_lea.hbm %s599_s12, 32  ;;  %s392_s25 = scalar_lea.hbm %s647_s1, 64 }
  0x4a   : > { %p389_p4 = scmp.ne.s32.totalorder %s599_s12, %s388_s22  ;;  %p393_p12 = scmp.lt.u32.totalorder %s599_s12, %s647_s1 }
  0x4b   : > { %p394_p1 = scmp.lt.u32.totalorder %s392_s25, %s388_s22  ;;  %p396_p8 = scmp.lt.u32.totalorder %s388_s22, %s599_s12 }
  0x4c   : > { %p390_p7 = pnand %p389_p4, %p655_p9 }
  0x4d   : > { %p395_p3 = por %p394_p1, %p393_p12 }
  0x4e   : > { %p391_p10 = pneg %p390_p7 }
  0x4f   : > { %p397_p11 = por %p396_p8, %p395_p3 }
  0x51   : > { %p398_p0 = pnand %p397_p11, %p391_p10 }
  0x53   : > { %401 = shalt.err (!%p398_p0)
}
  0x54   : > { %282 = dma.vmem_to_hbm [thread:$0]  (%p655_p9), %s594_s30, 32, %s599_s12, %s167_s13  }
  0x55 PF: > { %s193_s3 = sand.u32 1, %s436_s6   ;;  %p656_p6 = scmp.ne.s32.totalorder %s652_s21, 0 }
  0x56   : > { %p657_p13 = scmp.ge.s32.totalorder %s456_s11, 2  ;;  %s194_s4 = scalar_lea.sflag [#allocation4], %s193_s3 }
  0x58   : > { %p289_p2 = pnand %p657_p13, %p656_p6 }
  0x5a   : > { %431 = dma.done.wait (!%p289_p2), %s194_s4, 32  }
  0x5b   : > { %433 = vsyncadd (!%p289_p2), %s194_s4, 4294967264  ;;  %s17_s11 = sadd.s32 1, %s456_s11   ;;  %s658_s6 = smov %s440_s7 }
  0x5c   : > { %p14_p5 = scmp.ge.s32.totalorder %s17_s11, 4   ;;  %s659_s7 = smov %s444_s8 }
  0x5d   : > { %s660_s8 = smov %s528_s20  ;;  %s661_s9 = smov %s452_s10 }
  0x5e   : > { %s662_s10 = smov %s664_s14  ;;  %16 = sbr.rel (!%p14_p5) target bundleno = 6 (0x6), region = 72 }
  0x65   :  { %199 = vsyncpa [#allocation3], 1 }
  0x66   :  { %201 = vsyncpa [#allocation3 + $0x1], 1 }
  0x67   :  { %202 = vsyncpa [#allocation4], 1 }
  0x68   :  { %204 = vsyncpa [#allocation4 + $0x1], 1 }

</bundles_post_ra>
